<compile_context>
chip_gen: v7x
topology: tpu7x:2x2x1
jax: 0.10.0
libtpu: 0.0.40
codegen_flags: <defaults>
</compile_context>

<pallas_src>
import jax
import jax.numpy as jnp
from jax.experimental import pallas as pl
from jax.experimental.pallas import tpu as pltpu

_LANE = 128
_MAX_TILE = 512


def _round_up(x: int, m: int) -> int:
    return -(-x // m) * m


def _sublane_multiple(dtype) -> int:
    """Dtype-aware sublane granule: f32 -> 8, bf16 -> 16, int8/fp8 -> 32."""
    itemsize = max(1, jnp.dtype(dtype).itemsize)
    return 8 * max(1, 4 // itemsize)


def _tpu_config():
    """(vmem_capacity_bytes, mxu_edge, has_two_tensorcores) for this chip."""
    kind = ""
    try:
        kind = jax.devices()[0].device_kind.lower()
    except Exception:
        pass
    vmem = None
    try:
        info = pltpu.get_tpu_info()
        v = getattr(info, "vmem_capacity_bytes", None)
        if v:
            vmem = int(v)
    except Exception:
        vmem = None
    if vmem is None:
        if "v7" in kind:
            vmem = 64 << 20
        elif ("v2" in kind) or ("v3" in kind):
            vmem = 16 << 20
        else:
            vmem = 128 << 20  # v4 / v5e / v5p / v6e
    # MXU edge: 256 on v6e/v7x (2x256^2), 128 on v2..v5 (128x128 tiles).
    old_mxu = any(v in kind for v in ("v2", "v3", "v4", "v5"))
    mxu = 128 if old_mxu else 256
    # Chips with 2 TensorCores benefit from >=2 parallel grid blocks.
    two_cores = ("v7" in kind) or ("v4" in kind) or ("v5p" in kind)
    return vmem, mxu, two_cores


def _init_tile(dim: int, cap: int, mxu_align: int, min_align: int) -> int:
    """MXU-friendly tile <= cap for `dim`, with bounded padding waste."""
    cap = max(min_align, (cap // min_align) * min_align)
    if dim <= min_align:
        return min_align
    if dim < mxu_align or cap < mxu_align:
        return min(_round_up(dim, min_align), cap)
    # Largest MXU multiple <= cap whose pad stays within ~12.5% of the minimum
    # achievable pad (prefer big tiles, but don't blow up M/N padding).
    min_pad = _round_up(dim, mxu_align)
    t = (cap // mxu_align) * mxu_align
    while t > mxu_align and _round_up(dim, t) * 8 > min_pad * 9:
        t -= mxu_align
    return t


def _shrink_pair(tm: int, tn: int, m_align: int, n_align: int):
    """Halve the larger of tm/tn (squarish shrink); None if neither can shrink."""

    def halve(t, a):
        h = _round_up(t // 2, a)
        return h if 0 < h < t else None

    if tn >= tm:
        h = halve(tn, n_align)
        if h is not None:
            return tm, h
        h = halve(tm, m_align)
        if h is not None:
            return h, tn
    else:
        h = halve(tm, m_align)
        if h is not None:
            return h, tn
        h = halve(tn, n_align)
        if h is not None:
            return tm, h
    return None


# ----------------------------- kernels --------------------------------------


def _make_fullk_kernel(cast_dtype):
    def kernel(x_ref, w_ref, o_ref):
        x = x_ref[...]
        w = w_ref[...]
        if cast_dtype is not None:
            x = x.astype(cast_dtype)
            w = w.astype(cast_dtype)
        o_ref[...] = jnp.dot(x, w, preferred_element_type=jnp.float32).astype(o_ref.dtype)

    return kernel


def _make_ksplit_inplace_kernel(cast_dtype):
    # f32 output: the output block is resident across K, accumulate into it.
    def kernel(x_ref, w_ref, o_ref):
        @pl.when(pl.program_id(2) == 0)
        def _():
            o_ref[...] = jnp.zeros_like(o_ref)

        x = x_ref[...]
        w = w_ref[...]
        if cast_dtype is not None:
            x = x.astype(cast_dtype)
            w = w.astype(cast_dtype)
        o_ref[...] += jnp.dot(x, w, preferred_element_type=jnp.float32)

    return kernel


def _make_ksplit_scratch_kernel(cast_dtype):
    # Narrow output dtype (e.g. bf16): accumulate in an f32 VMEM scratch.
    def kernel(x_ref, w_ref, o_ref, acc_ref):
        @pl.when(pl.program_id(2) == 0)
        def _():
            acc_ref[...] = jnp.zeros_like(acc_ref)

        x = x_ref[...]
        w = w_ref[...]
        if cast_dtype is not None:
            x = x.astype(cast_dtype)
            w = w.astype(cast_dtype)
        acc_ref[...] += jnp.dot(x, w, preferred_element_type=jnp.float32)

        @pl.when(pl.program_id(2) == pl.num_programs(2) - 1)
        def _():
            o_ref[...] = acc_ref[...].astype(o_ref.dtype)

    return kernel


# ----------------------------- wrapper ---------------------------------------


def linear_forward(
    x: jax.Array,
    weights_t: jax.Array,
    *,
    max_tm: int = _MAX_TILE,
    max_tn: int = _MAX_TILE,
    max_tk: int | None = None,
    use_bf16_mxu: bool = False,
) -> jax.Array:
    """x: (..., d_in), weights_t: (d_in, d_out) -> (..., d_out)."""
    *lead, d_in = x.shape
    d_in_w, d_out = weights_t.shape
    assert d_in == d_in_w, (d_in, d_in_w)

    m = 1
    for s in lead:
        m *= s
    out_dtype = jnp.result_type(x.dtype, weights_t.dtype)
    if m == 0:
        return jnp.zeros((*lead, d_out), out_dtype)

    x2 = x.reshape(m, d_in)

    xi = jnp.dtype(x.dtype).itemsize
    wi = jnp.dtype(weights_t.dtype).itemsize
    oi = jnp.dtype(out_dtype).itemsize
    sub_m = _sublane_multiple(x.dtype)

    vmem_cap, mxu, two_cores = _tpu_config()
    tile_budget = min((vmem_cap * 7) // 10, 100 << 20)
    vmem_limit = min(int(vmem_cap * 0.85), 127 << 20)

    cast_dtype = None
    if use_bf16_mxu and x.dtype == jnp.float32 and weights_t.dtype == jnp.float32:
        cast_dtype = jnp.bfloat16

    # ---- tile selection (MXU-aligned, decoupled from divisibility) ----------
    tm = _init_tile(m, max_tm, mxu, sub_m)
    tn = _init_tile(d_out, max_tn, mxu, _LANE)
    k_full = _round_up(d_in, _LANE)
    if max_tk is None:
        tk = k_full
    else:
        tk = max(_LANE, min(k_full, _round_up(max_tk, _LANE)))
    force_ksplit = tk < k_full

    def fullk_fp(tm_, tn_):
        # Everything double-buffered by the pipeline.
        return 2 * (tm_ * k_full * xi + k_full * tn_ * wi + tm_ * tn_ * oi)

    def ksplit_fp(tm_, tn_, tk_):
        # Output (and f32 scratch) are resident across K -> counted once.
        f = 2 * (tm_ * tk_ * xi + tk_ * tn_ * wi) + tm_ * tn_ * oi
        if out_dtype != jnp.float32:
            f += tm_ * tn_ * 4
        return f

    single_shot = (not force_ksplit) and fullk_fp(tm, tn) <= tile_budget
    if not single_shot and not force_ksplit:
        # Barely misses the budget: one squarish shrink step to stay single-shot
        # (avoids the K reduction axis + accumulator round trips entirely).
        cand = _shrink_pair(tm, tn, sub_m, _LANE)
        if cand is not None and fullk_fp(*cand) <= tile_budget:
            tm, tn = cand
            single_shot = True

    if single_shot:
        tk = k_full
    else:
        # Split K; keep tm/tn large (HBM traffic ~ K*(1/tm + 1/tn)).
        while ksplit_fp(tm, tn, tk) > tile_budget and tk > _LANE:
            tk = max(_LANE, _round_up(tk // 2, _LANE))
        while ksplit_fp(tm, tn, tk) > tile_budget:
            cand = _shrink_pair(tm, tn, sub_m, _LANE)
            if cand is None:
                break
            tm, tn = cand

    # ---- padded sizes / grid -------------------------------------------------
    m_pad = _round_up(m, tm)
    n_pad = _round_up(d_out, tn)
    k_pad = _round_up(d_in, tk)
    gm, gn, gk = m_pad // tm, n_pad // tn, k_pad // tk

    # Two TensorCores want at least 2 parallel blocks.
    if two_cores and gm * gn == 1:
        if n_pad >= 2 * _LANE and (n_pad // 2) % _LANE == 0:
            tn = n_pad // 2
        elif m_pad >= 2 * sub_m and (m_pad // 2) % sub_m == 0:
            tm = m_pad // 2
        gm, gn = m_pad // tm, n_pad // tn

    # ---- zero padding only when needed (K-pad contributes zeros -> exact) ---
    pm, pk, pn = m_pad - m, k_pad - d_in, n_pad - d_out
    if pm or pk:
        x2 = jnp.pad(x2, ((0, pm), (0, pk)))
    w = weights_t
    if pk or pn:
        w = jnp.pad(w, ((0, pk), (0, pn)))

    if gk == 1:
        # Single shot over K: no reduction axis, pure parallel grid.  Choose the
        # ordering that keeps the heavier operand resident in VMEM.
        x_bytes = m_pad * k_pad * xi
        w_bytes = k_pad * n_pad * wi
        traffic_i_outer = x_bytes + gm * w_bytes  # j fastest: x resident per i
        traffic_j_outer = gn * x_bytes + w_bytes  # i fastest: W resident per j
        if traffic_j_outer <= traffic_i_outer:
            grid = (gn, gm)
            x_spec = pl.BlockSpec((tm, k_pad), lambda j, i: (i, 0))
            w_spec = pl.BlockSpec((k_pad, tn), lambda j, i: (0, j))
            o_spec = pl.BlockSpec((tm, tn), lambda j, i: (i, j))
        else:
            grid = (gm, gn)
            x_spec = pl.BlockSpec((tm, k_pad), lambda i, j: (i, 0))
            w_spec = pl.BlockSpec((k_pad, tn), lambda i, j: (0, j))
            o_spec = pl.BlockSpec((tm, tn), lambda i, j: (i, j))
        kernel = _make_fullk_kernel(cast_dtype)
        scratch = []
        semantics = ("parallel", "parallel")
    else:
        grid = (gm, gn, gk)
        x_spec = pl.BlockSpec((tm, tk), lambda i, j, k: (i, k))
        w_spec = pl.BlockSpec((tk, tn), lambda i, j, k: (k, j))
        o_spec = pl.BlockSpec((tm, tn), lambda i, j, k: (i, j))
        semantics = ("parallel", "parallel", "arbitrary")
        if out_dtype == jnp.float32:
            kernel = _make_ksplit_inplace_kernel(cast_dtype)
            scratch = []
        else:
            kernel = _make_ksplit_scratch_kernel(cast_dtype)
            scratch = [pltpu.VMEM((tm, tn), jnp.float32)]

    out = pl.pallas_call(
        kernel,
        out_shape=jax.ShapeDtypeStruct((m_pad, n_pad), out_dtype),
        grid_spec=pltpu.PrefetchScalarGridSpec(
            num_scalar_prefetch=0,
            grid=grid,
            in_specs=[x_spec, w_spec],
            out_specs=o_spec,
            scratch_shapes=scratch,
        ),
        compiler_params=pltpu.CompilerParams(
            dimension_semantics=semantics,
            vmem_limit_bytes=int(vmem_limit),
        ),
    )(x2, w)

    if pm or pn:
        out = out[:m, :d_out]
    return out.reshape(*lead, d_out)


# ----------------------------- demo / checks ---------------------------------

if __name__ == "__main__":
    key = jax.random.PRNGKey(0)

    def make_case(k, lead, d_in, d_out, dtype):
        kx, kw = jax.random.split(k)
        x = jax.random.normal(kx, (*lead, d_in), dtype=jnp.float32).astype(dtype)
        # The PyTorch module receives (d_out, d_in) weights and stores the transpose.
        weights = jax.random.normal(kw, (d_out, d_in), dtype=jnp.float32).astype(dtype)
        return x, weights.T  # (d_in, d_out)

    def rel_err(a, b):
        a = a.astype(jnp.float32)
        b = b.astype(jnp.float32)
        return float(jnp.linalg.norm(a - b) / (jnp.linalg.norm(b) + 1e-30))

    k1, k2, k3, k4 = jax.random.split(key, 4)

    # Case 1: module-sized shapes (batch=2, seq=8, d_in=32, d_out=64),
    # single-shot full-K path (no reduction axis).
    x1, wt1 = make_case(k1, (2, 8), 32, 64, jnp.float32)
    y1 = linear_forward(x1, wt1)
    jax.block_until_ready(y1)
    ref1 = jnp.einsum("...k,kn->...n", x1, wt1)
    assert y1.shape == (2, 8, 64) and y1.dtype == jnp.float32
    assert rel_err(y1, ref1) < 2e-2, rel_err(y1, ref1)

    # Case 2: forced K-split — f32 output accumulates in-place into the output.
    x2_, wt2 = make_case(k2, (2, 8), 256, 128, jnp.float32)
    y2 = linear_forward(x2_, wt2, max_tk=128)
    jax.block_until_ready(y2)
    ref2 = jnp.einsum("...k,kn->...n", x2_, wt2)
    assert y2.shape == (2, 8, 128)
    assert rel_err(y2, ref2) < 2e-2, rel_err(y2, ref2)

    # Case 3: bf16 operands/output with K-split — f32 accumulator scratch path.
    x3, wt3 = make_case(k3, (2, 8), 256, 128, jnp.bfloat16)
    y3 = linear_forward(x3, wt3, max_tk=128)
    jax.block_until_ready(y3)
    ref3 = jnp.einsum("...k,kn->...n", x3.astype(jnp.float32), wt3.astype(jnp.float32))
    assert y3.dtype == jnp.bfloat16
    assert rel_err(y3, ref3) < 2e-2, rel_err(y3, ref3)

    # Case 4: optional bf16-MXU fast path on f32 inputs (casts inside kernel).
    x4, wt4 = make_case(k4, (2, 8), 256, 128, jnp.float32)
    y4 = linear_forward(x4, wt4, use_bf16_mxu=True)
    jax.block_until_ready(y4)
    ref4 = jnp.einsum("...k,kn->...n", x4, wt4)
    assert rel_err(y4, ref4) < 2e-2, rel_err(y4, ref4)

    print("KERNEL_OK")
</pallas_src>

<mosaic_0001>
module attributes {stable_mosaic.version = 11 : i64} {
  func.func @kernel(%arg0: i32, %arg1: i32, %arg2: memref<16x128xf32, #tpu.memory_space<vmem>>, %arg3: memref<128x128xf32, #tpu.memory_space<vmem>>, %arg4: memref<16x128xf32, #tpu.memory_space<vmem>>) attributes {dimension_semantics = [#tpu.dimension_semantics<parallel>, #tpu.dimension_semantics<parallel>], iteration_bounds = array<i64: 1, 1>, scalar_prefetch = 0 : i64, scratch_operands = 0 : i64, tpu.core_type = #tpu.core_type<tc>, window_params = [{transform_indices = @transform_0, window_bounds = array<i64: 16, 128>}, {transform_indices = @transform_1, window_bounds = array<i64: 128, 128>}, {transform_indices = @transform_2, window_bounds = array<i64: 16, 128>}]} {
    %c0 = arith.constant 0 : index
    %c0_0 = arith.constant 0 : index
    %0 = vector.load %arg2[%c0, %c0_0] : memref<16x128xf32, #tpu.memory_space<vmem>>, vector<16x128xf32>
    %c0_1 = arith.constant 0 : index
    %c0_2 = arith.constant 0 : index
    %1 = vector.load %arg3[%c0_1, %c0_2] : memref<128x128xf32, #tpu.memory_space<vmem>>, vector<128x128xf32>
    %cst = arith.constant dense<0.000000e+00> : vector<16x128xf32>
    %2 = tpu.matmul %0, %1, %cst {dimension_numbers = #tpu.dot_dimension_numbers<[1], [0], [0], [1], [0, 0, 1, 1], [], []>} : vector<16x128xf32>, vector<128x128xf32>, vector<16x128xf32> -> vector<16x128xf32>
    %c0_3 = arith.constant 0 : index
    %c0_4 = arith.constant 0 : index
    %3 = vector.load %arg4[%c0_3, %c0_4] : memref<16x128xf32, #tpu.memory_space<vmem>>, vector<16x128xf32>
    tpu.vector_store %arg4[%c0_3, %c0_4], %2 {strides = array<i32>} : memref<16x128xf32, #tpu.memory_space<vmem>>, vector<16x128xf32>,
    return
  }
  func.func @transform_0(%arg0: i32, %arg1: i32) -> (i32, i32) {
    %c0_i32 = arith.constant 0 : i32
    %c0_i32_0 = arith.constant 0 : i32
    return %arg1, %c0_i32 : i32, i32
  }
  func.func @transform_1(%arg0: i32, %arg1: i32) -> (i32, i32) {
    %c0_i32 = arith.constant 0 : i32
    %c0_i32_0 = arith.constant 0 : i32
    return %c0_i32, %arg0 : i32, i32
  }
  func.func @transform_2(%arg0: i32, %arg1: i32) -> (i32, i32) {
    %c0_i32 = arith.constant 0 : i32
    return %arg1, %arg0 : i32, i32
  }
}

</mosaic_0001>

<bundles_post_ra>
// kernel: tpu_custom_call.1
= control target key start
LH: loop header
LB: loop body
LE: loop exit
PB: predicated region body
PF: predicated region fallthrough
CT: control target
= control target key end

     0   :  { %7 = vsyncpa [#allocation3], 0  ;;  %s380_s0 = inlined_call_operand.hbm [shape: f32[16,128], index: 0, kind: input, shape index: {}]   ;;  %s381_s1 = inlined_call_operand.hbm [shape: f32[128,128], index: 1, kind: input, shape index: {}]   ;;  %s382_s2 = inlined_call_operand.hbm [shape: f32[16,128], index: 2, kind: output, shape index: {}]  }
   0x1   :  { %8 = vsyncpa [#allocation6], 0 }
   0x2   :  { %9 = vsyncpa [#allocation4], 0  ;;  %s315_s9 = smov [#allocation2]   ;;  %s243_s13 = scalar_lea.hbm %s380_s0, 256 }
   0x3   :  { %s15_s10 = sshll.u32 %s315_s9, 4  ;;  %p244_p0 = scmp.ne.s32.totalorder %s380_s0, %s243_s13  ;;  %s16_s10 = int_to_ptr.vmem [resolvable:$true] %s15_s10 }
   0x4   :  { %p247_p1 = scmp.lt.u32.totalorder %s243_s13, %s380_s0 }
   0x6   :  { %p249_p2 = pnand %p247_p1, %p244_p0 }
   0x8   :  { %252 = shalt.err (!%p249_p2)
}
   0x9   :  { %s253_s18 = scalar_lea.vmem %s16_s10, 256  ;;  %p258_p4 = scmp.lt.s32.totalorder %s16_s10, %s16_s10 }
   0xa   :  { %p254_p3 = scmp.ne.s32.totalorder %s16_s10, %s253_s18  ;;  %p259_p5 = scmp.lt.s32.totalorder %s253_s18, %s253_s18 }
   0xc   :  { %p260_p6 = por %p259_p5, %p258_p4 }
   0xe   :  { %p261_p7 = pnand %p260_p6, %p254_p3 }
  0x10   :  { %264 = shalt.err (!%p261_p7)
}
  0x11   :  { %s316_s19 = smov 128   ;;  %s317_s20 = smov 8  }
  0x12   :  { %21 = dma.hbm_to_vmem [thread:$0]  %s380_s0, 256, %s16_s10, [#allocation3], %s316_s19, %s316_s19, %s317_s20  }
  0x13   :  { %s318_s23 = smov [#allocation5]   ;;  %s265_s27 = scalar_lea.hbm %s381_s1, 2048 }
  0x14   :  { %s27_s24 = sshll.u32 %s318_s23, 4  ;;  %p266_p8 = scmp.ne.s32.totalorder %s381_s1, %s265_s27  ;;  %s28_s24 = int_to_ptr.vmem [resolvable:$true] %s27_s24 }
  0x15   :  { %p269_p9 = scmp.lt.u32.totalorder %s265_s27, %s381_s1 }
  0x17   :  { %p271_p10 = pnand %p269_p9, %p266_p8 }
  0x19   :  { %274 = shalt.err (!%p271_p10)
}
  0x1a   :  { %s275_s4 = scalar_lea.vmem %s28_s24, 2048  ;;  %p280_p12 = scmp.lt.s32.totalorder %s28_s24, %s28_s24 }
  0x1b   :  { %p276_p11 = scmp.ne.s32.totalorder %s28_s24, %s275_s4  ;;  %p281_p13 = scmp.lt.s32.totalorder %s275_s4, %s275_s4 }
  0x1d   :  { %p282_p0 = por %p281_p13, %p280_p12 }
  0x1f   :  { %p283_p1 = pnand %p282_p0, %p276_p11 }
  0x21   :  { %286 = shalt.err (!%p283_p1)
}
  0x22   :  { %33 = dma.hbm_to_vmem [thread:$0]  %s381_s1, 2048, %s28_s24, [#allocation6], %s316_s19, %s316_s19, %s317_s20  }
  0x23   :  { %309 = dma.done.wait [#allocation3], 256  }
  0x24   :  { %310 = vsyncadd [#allocation3], 4294967040 }
  0x25   :  { %311 = dma.done.wait [#allocation6], 2048  }
  0x26   :  { %312 = vsyncadd [#allocation6], 4294965248  ;;  %v42_v0 = vld [vmem:[#allocation5] sm:$0xff]  ;;  %v43_v1 = vld [vmem:[#allocation5 + $0x8] sm:$0xff]  ;;  %s319_s1 = smov [#allocation7]  }
  0x27   :  { %v44_v2 = vld [vmem:[#allocation5 + $0x10] sm:$0xff]  ;;  %v206_v3 = vpack.c.bf16 %v43_v1, %v42_v0  ;;  %v45_v4 = vld [vmem:[#allocation5 + $0x18] sm:$0xff]  ;;  %v46_v6 = vld [vmem:[#allocation5 + $0x20] sm:$0xff]  ;;  %s140_s6 = sshll.u32 %s319_s1, 4  ;;  %s141_s6 = int_to_ptr.vmem [resolvable:$true] %s140_s6 }
  0x28   :  { %v210_v5 = vpack.c.bf16 %v45_v4, %v44_v2  ;;  %v47_v7 = vld [vmem:[#allocation5 + $0x28] sm:$0xff]  ;;  %v40_v9 = vld [vmem:[#allocation2] sm:$0xff]  ;;  %v49_v11 = vld [vmem:[#allocation5 + $0x38] sm:$0xff]  ;;  %s287_s7 = scalar_lea.vmem %s141_s6, 256  ;;  %p292_p3 = scmp.lt.s32.totalorder %s141_s6, %s141_s6 }
  0x29   :  { %207 = vmatprep.subr.bf16.mxu0 %v206_v3  ;;  %v214_v8 = vpack.c.bf16 %v47_v7, %v46_v6  ;;  %v48_v10 = vld [vmem:[#allocation5 + $0x30] sm:$0xff]  ;;  %203 = vmatprep.mubr.f32.mxu0 %v40_v9  ;;  %v50_v13 = vld [vmem:[#allocation5 + $0x40] sm:$0xff]  ;;  %v51_v14 = vld [vmem:[#allocation5 + $0x48] sm:$0xff]  ;;  %p288_p2 = scmp.ne.s32.totalorder %s141_s6, %s287_s7  ;;  %p293_p4 = scmp.lt.s32.totalorder %s287_s7, %s287_s7 }
  0x2a   :  { %209 = vmatpush3.bf16.msra.mxu0 %v206_v3  ;;  %v218_v12 = vpack.c.bf16 %v49_v11, %v48_v10  ;;  %v222_v15 = vpack.c.bf16 %v51_v14, %v50_v13  ;;  %v52_v16 = vld [vmem:[#allocation5 + $0x50] sm:$0xff]  ;;  %v53_v17 = vld [vmem:[#allocation5 + $0x58] sm:$0xff]  ;;  %v54_v19 = vld [vmem:[#allocation5 + $0x60] sm:$0xff] }
  0x2b   :  { %211 = vmatprep.subr.bf16.mxu0 %v210_v5  ;;  %v226_v18 = vpack.c.bf16 %v53_v17, %v52_v16  ;;  %v55_v20 = vld [vmem:[#allocation5 + $0x68] sm:$0xff]  ;;  %v56_v22 = vld [vmem:[#allocation5 + $0x70] sm:$0xff]  ;;  %v57_v23 = vld [vmem:[#allocation5 + $0x78] sm:$0xff]  ;;  %p294_p5 = por %p293_p4, %p292_p3 }
  0x2c   :  { %v230_v21 = vpack.c.bf16 %v55_v20, %v54_v19  ;;  %v234_v24 = vpack.c.bf16 %v57_v23, %v56_v22  ;;  %v41_v25 = vld [vmem:[#allocation2 + $0x8] sm:$0xff] }
  0x2d   :  { %p295_p6 = pnand %p294_p5, %p288_p2 }
  0x2e   :  { %213 = vmatpush3.bf16.msra.mxu0 %v210_v5 }
  0x2f   :  { %215 = vmatprep.subr.bf16.mxu0 %v214_v8 }
  0x32   :  { %217 = vmatpush3.bf16.msra.mxu0 %v214_v8 }
  0x33   :  { %219 = vmatprep.subr.bf16.mxu0 %v218_v12 }
  0x36   :  { %221 = vmatpush3.bf16.msra.mxu0 %v218_v12 }
  0x37   :  { %223 = vmatprep.subr.bf16.mxu0 %v222_v15 }
  0x3a   :  { %225 = vmatpush3.bf16.msra.mxu0 %v222_v15 }
  0x3b   :  { %227 = vmatprep.subr.bf16.mxu0 %v226_v18 }
  0x3e   :  { %229 = vmatpush3.bf16.msra.mxu0 %v226_v18 }
  0x3f   :  { %231 = vmatprep.subr.bf16.mxu0 %v230_v21 }
  0x42   :  { %233 = vmatpush3.bf16.msra.mxu0 %v230_v21 }
  0x43   :  { %235 = vmatprep.subr.bf16.mxu0 %v234_v24 }
  0x46   :  { %237 = vmatpush3.bf16.msra.mxu0 %v234_v24 }
  0x49   :  { %204 = vmatmul.mubr.f32.vlgmr.msra.gmra.mrb[0].mxu0 %v41_v25 }
 0x11c   :  { %v205_v26 = vpop.f32.mrb[0].mxu0 }
 0x11d   :  { %134 = vst [vmem:[#allocation7 + $0x8] sm:$0xff] %v205_v26  ;;  %v124_v27 = vpop.f32.mrb[1].mxu0 }
 0x11e   :  { %133 = vst [vmem:[#allocation7] sm:$0xff] %v124_v27 }
 0x11f   :  { %298 = shalt.err (!%p295_p6)
}
 0x120   :  { %s299_s10 = scalar_lea.hbm %s382_s2, 256 }
 0x121   :  { %p300_p7 = scmp.ne.s32.totalorder %s382_s2, %s299_s10  ;;  %p303_p8 = scmp.lt.u32.totalorder %s299_s10, %s382_s2 }
 0x123   :  { %p305_p9 = pnand %p303_p8, %p300_p7 }
 0x125   :  { %308 = shalt.err (!%p305_p9)
}
 0x126   :  { %146 = dma.vmem_to_hbm [thread:$0]  %s141_s6, 256, %s382_s2, [#allocation4], %s316_s19, %s316_s19, %s317_s20  }
 0x127   :  { %313 = dma.done.wait [#allocation4], 256  }
 0x128   :  { %314 = vsyncadd [#allocation4], 4294967040 }
 0x129   :  { %150 = vsyncpa [#allocation3], 1 }
 0x12a   :  { %151 = vsyncpa [#allocation6], 1 }
 0x12b   :  { %152 = vsyncpa [#allocation4], 1 }

</bundles_post_ra>
